<compile_context>
chip_gen: v7x
topology: tpu7x:2x2x1
jax: 0.10.0
libtpu: 0.0.40
codegen_flags: <defaults>
</compile_context>

<pallas_src>
import math
import functools

import jax
import jax.numpy as jnp
from jax.experimental import pallas as pl
from jax.experimental.pallas import tpu as pltpu


def _round_up(x: int, m: int) -> int:
    return ((x + m - 1) // m) * m


def _vmem_capacity_bytes() -> int:
    """Physical VMEM per TensorCore; conservative fallback (v7x = 64 MiB)."""
    try:
        cap = int(pltpu.get_tpu_info().vmem_capacity_bytes)
        if cap > 0:
            return cap
    except Exception:
        pass
    return 64 * 2**20


def _embed_kernel(ids_ref, table_ref, out_ref, *, scale):
    """One grid step: embed T tokens.

    ids_ref:   VMEM (T, 1)  int32  -- token ids for this block (sublane-major)
    table_ref: VMEM (V, D)  float  -- full embedding table (whole-array, single buffer)
    out_ref:   VMEM (T, D)  float  -- output tile

    out[t, :] = scale * table[ids[t], :]
    implemented as a one-hot (T, V) x (V, D) MXU matmul (exact 0/1 selector),
    followed by a VPU scale fused into the full-tile store.
    """
    tokens = out_ref.shape[0]
    vocab = table_ref.shape[0]

    ids = ids_ref[...]                                               # (T, 1) int32
    vocab_iota = jax.lax.broadcasted_iota(jnp.int32, (tokens, vocab), 1)
    onehot = jnp.where(ids == vocab_iota,
                       jnp.float32(1.0), jnp.float32(0.0))           # (T, V) exact 0/1

    rows = jax.lax.dot_general(
        onehot,
        table_ref[...].astype(jnp.float32),
        dimension_numbers=(((1,), (0,)), ((), ())),
        preferred_element_type=jnp.float32,
        # Mosaic supports only DEFAULT (bf16) / HIGHEST (fp32); DEFAULT would
        # truncate the f32 table.  MXU is not the bottleneck here (small V).
        precision=jax.lax.Precision.HIGHEST,
    )                                                                # (T, D) f32

    # Scale applied as a single VPU multiply fused into the lane-dense store.
    out_ref[...] = (rows * jnp.float32(scale)).astype(out_ref.dtype)


def embeddings_forward(ids, table, d_model=None, *, tokens_per_block=1024,
                       out_dtype=None):
    """ids: (batch, seq) integer tokens; table: (vocab, d_model) float weights.
    Returns (batch, seq, d_model) == Embedding(ids) * sqrt(d_model)."""
    batch, seq = ids.shape
    vocab, dm = table.shape
    if d_model is None:
        d_model = dm
    assert dm == d_model
    if out_dtype is None:
        out_dtype = table.dtype
    n_tok = batch * seq
    scale = math.sqrt(d_model)

    vmem_cap = _vmem_capacity_bytes()
    headroom = 2 * 2**20
    budget = vmem_cap - headroom
    table_bytes = vocab * d_model * table.dtype.itemsize
    if table_bytes > budget // 2:
        # TODO(synk): large-vocab path -- keep the table in HBM
        # (memory_space=pl.ANY) and row-gather only the needed rows per block
        # (scalar-prefetched ids + pl.Element row BlockSpec, or a manual
        # double-buffered make_async_copy gather).  Not needed for demo sizes.
        raise NotImplementedError("embedding table too large for the VMEM-resident path")

    out_itemsize = jnp.dtype(out_dtype).itemsize

    def _block_bytes(tpb):
        out_blk = tpb * d_model * out_itemsize          # double-buffered output tile
        ids_blk = tpb * 128 * 4                         # (T,1) i32 lane-pads to (T,128)
        onehot_blk = tpb * _round_up(vocab, 128) * 4    # (T,V) selector scratch
        return 2 * out_blk + 2 * ids_blk + onehot_blk

    # Big tiles amortise per-grid-step overhead (>=512 KiB output/step at the
    # default).  Keep a multiple of 8 sublanes (128 preferred for the MXU M dim).
    tpb = max(8, min(_round_up(tokens_per_block, 128), _round_up(n_tok, 8)))
    # Never collapse the grid to a single step for n_tok > 8: v7x has two
    # TensorCores and dimension_semantics=("parallel",) shards the grid axis.
    if n_tok > 8 and tpb >= n_tok:
        tpb = _round_up(-(-n_tok // 2), 8)
    # Shrink if (single-buffered) table + blocks would overflow VMEM.
    while tpb > 8 and table_bytes + _block_bytes(tpb) > budget:
        tpb = max(8, _round_up(tpb // 2, 8))

    n_pad = _round_up(n_tok, tpb)
    n_blocks = n_pad // tpb

    ids_flat = ids.reshape(n_tok).astype(jnp.int32)
    ids_padded = jnp.pad(ids_flat, (0, n_pad - n_tok))   # pad with id 0 (always in range)
    ids_col = ids_padded.reshape(n_pad, 1)               # (N, 1): ids along sublanes

    vmem_limit = int(max(16 * 2**20,
                         min(table_bytes + _block_bytes(tpb) + 4 * 2**20,
                             vmem_cap - 2**20)))

    kernel = functools.partial(_embed_kernel, scale=scale)

    out_flat = pl.pallas_call(
        kernel,
        out_shape=jax.ShapeDtypeStruct((n_pad, d_model), out_dtype),
        grid=(n_blocks,),
        in_specs=[
            # Per-block token ids as a normal blocked VMEM input.
            pl.BlockSpec((tpb, 1), lambda i: (i, 0)),
            # Whole embedding table resident in VMEM once (single-buffered,
            # no per-step pipeline copies).
            pl.BlockSpec(memory_space=pltpu.MemorySpace.VMEM),
        ],
        out_specs=pl.BlockSpec((tpb, d_model), lambda i: (i, 0)),
        compiler_params=pltpu.CompilerParams(
            dimension_semantics=("parallel",),   # independent blocks -> multi-TC sharding
            vmem_limit_bytes=vmem_limit,
        ),
    )(ids_col, table)

    return out_flat[:n_tok].reshape(batch, seq, d_model)


if __name__ == "__main__":
    # Small, deterministic config.
    d_model = 128
    vocab_size = 64
    batch, seq = 2, 8

    key = jax.random.PRNGKey(0)
    k_tab, k_ids = jax.random.split(key)

    # nn.Embedding default init: weight ~ N(0, 1).
    table = jax.random.normal(k_tab, (vocab_size, d_model), dtype=jnp.float32)
    ids = jax.random.randint(k_ids, (batch, seq), 0, vocab_size, dtype=jnp.int32)

    out = embeddings_forward(ids, table, d_model)
    out = jax.block_until_ready(out)

    # Reference check against plain JAX (same semantics as the PyTorch module).
    ref = table[ids] * math.sqrt(d_model)
    assert out.shape == (batch, seq, d_model)
    assert jnp.allclose(out, ref, atol=1e-4, rtol=1e-5), float(jnp.max(jnp.abs(out - ref)))

    print("KERNEL_OK")
</pallas_src>

<mosaic_0001>
module attributes {stable_mosaic.version = 11 : i64} {
  func.func @_embed_kernel(%arg0: i32, %arg1: memref<8x1xi32, #tpu.memory_space<vmem>>, %arg2: memref<64x128xf32, #tpu.memory_space<vmem>>, %arg3: memref<8x128xf32, #tpu.memory_space<vmem>>) attributes {dimension_semantics = [#tpu.dimension_semantics<parallel>], iteration_bounds = array<i64: 2>, scalar_prefetch = 0 : i64, scratch_operands = 0 : i64, tpu.core_type = #tpu.core_type<tc>, window_params = [{transform_indices = @transform_0, window_bounds = array<i64: 8, 1>}, {pipeline_mode = #tpu.pipeline_mode<synchronous>, transform_indices = @transform_1, window_bounds = array<i64: 64, 128>}, {transform_indices = @transform_2, window_bounds = array<i64: 8, 128>}]} {
    %c0 = arith.constant 0 : index
    %c0_0 = arith.constant 0 : index
    %0 = vector.load %arg1[%c0, %c0_0] : memref<8x1xi32, #tpu.memory_space<vmem>>, vector<8x1xi32>
    %1 = tpu.iota {dimensions = array<i32: 1>} : vector<8x64xi32>
    %2 = vector.broadcast %0 : vector<8x1xi32> to vector<8x64xi32>
    %3 = arith.cmpi eq, %2, %1 : vector<8x64xi32>
    %cst = arith.constant 1.000000e+00 : f32
    %cst_1 = arith.constant 0.000000e+00 : f32
    %4 = vector.broadcast %cst : f32 to vector<8x64xf32>
    %5 = vector.broadcast %cst_1 : f32 to vector<8x64xf32>
    %6 = arith.select %3, %4, %5 : vector<8x64xi1>, vector<8x64xf32>
    %c0_2 = arith.constant 0 : index
    %c0_3 = arith.constant 0 : index
    %7 = vector.load %arg2[%c0_2, %c0_3] : memref<64x128xf32, #tpu.memory_space<vmem>>, vector<64x128xf32>
    %cst_4 = arith.constant dense<0.000000e+00> : vector<8x128xf32>
    %8 = tpu.matmul %6, %7, %cst_4 {dimension_numbers = #tpu.dot_dimension_numbers<[1], [0], [0], [1], [0, 0, 1, 1], [], []>, precision = #tpu.contract_precision<fp32>} : vector<8x64xf32>, vector<64x128xf32>, vector<8x128xf32> -> vector<8x128xf32>
    %cst_5 = arith.constant 11.3137083 : f32
    %9 = vector.broadcast %cst_5 : f32 to vector<8x128xf32>
    %10 = arith.mulf %8, %9 : vector<8x128xf32>
    %c0_6 = arith.constant 0 : index
    %c0_7 = arith.constant 0 : index
    %11 = vector.load %arg3[%c0_6, %c0_7] : memref<8x128xf32, #tpu.memory_space<vmem>>, vector<8x128xf32>
    tpu.vector_store %arg3[%c0_6, %c0_7], %10 {strides = array<i32>} : memref<8x128xf32, #tpu.memory_space<vmem>>, vector<8x128xf32>,
    return
  }
  func.func @transform_0(%arg0: i32) -> (i32, i32) {
    %c0_i32 = arith.constant 0 : i32
    %c0_i32_0 = arith.constant 0 : i32
    return %arg0, %c0_i32 : i32, i32
  }
  func.func @transform_1(%arg0: i32) -> (i32, i32) {
    %c0_i32 = arith.constant 0 : i32
    %c0_i32_0 = arith.constant 0 : i32
    %c0_i32_1 = arith.constant 0 : i32
    return %c0_i32, %c0_i32_0 : i32, i32
  }
  func.func @transform_2(%arg0: i32) -> (i32, i32) {
    %c0_i32 = arith.constant 0 : i32
    %c0_i32_0 = arith.constant 0 : i32
    return %arg0, %c0_i32 : i32, i32
  }
}

</mosaic_0001>

<bundles_post_ra>
// kernel: tpu_custom_call.1
= control target key start
LH: loop header
LB: loop body
LE: loop exit
PB: predicated region body
PF: predicated region fallthrough
CT: control target
= control target key end

     0   :  { %7 = vsyncpa [#allocation3], 0  ;;  %s1474_s0 = inlined_call_operand.vmem [shape: s32[16,1], index: 0, kind: input, shape index: {}]   ;;  %s1475_s1 = inlined_call_operand.hbm [shape: f32[64,128], index: 1, kind: input, shape index: {}]   ;;  %s1476_s2 = inlined_call_operand.hbm [shape: f32[16,128], index: 2, kind: output, shape index: {}]  }
   0x1   :  { %8 = vsyncpa [#allocation4], 0 }
   0x2   :  { %10 = vsyncpa [#allocation4 + $0x1], 0  ;;  %s1238_s9 = smov 0   ;;  %s1240_s10 = smov 0  }
   0x3   :  { %s1242_s11 = smov 0   ;;  %s1244_s12 = smov 0  }
   0x4 LB: > { %s1259_s13 = sadd.s32 4294967295, %s1213_s12   ;;  %s798_s14 = sadd.s32 4294967294, %s1213_s12   ;;  %s1213_s12 = sphi %s1244_s12, %s1492_s12   ;;  %s1209_s11 = sphi %s1242_s11, %s1491_s11   ;;  %s1205_s10 = sphi %s1240_s10, %s1490_s10   ;;  %s1201_s9 = sphi %s1238_s9, %s1489_s9  }
   0x5   : > { %s1263_s15 = sadd.s32 1, %s1213_s12   ;;  %s70_s16 = sadd.s32 1, %s1209_s11 }
   0x6   : > { %s67_s17 = ssub.s32 %s1213_s12, %s1263_s15  ;;  %p80_p0 = scmp.ne.s32.totalorder %s1209_s11, %s1205_s10 }
   0x7   : > { %p68_p1 = scmp.eq.s32.totalorder %s67_s17, 0  ;;  %p81_p2 = scmp.eq.s32.totalorder %s1259_s13, 1 }
   0x8   : > { %p86_p3 = scmp.ne.s32.totalorder %s1205_s10, %s1201_s9  ;;  %p87_p4 = scmp.eq.s32.totalorder %s798_s14, 1 }
   0x9   : > { %s1274_s18 = scalar_select %p68_p1, %s1209_s11, %s70_s16  }
   0xa   : > { %p1276_p5 = por %p81_p2, %p80_p0  ;;  %p1280_p6 = por %p87_p4, %p86_p3 }
   0xb   : > { %p799_p7 = scmp.ge.s32.totalorder %s1213_s12, 1  ;;  %p94_p8 = scmp.lt.s32.totalorder %s1213_s12, 3 }
   0xc   : > { %s1480_s19 = scalar_select %p1276_p5, 1, 0 }
   0xd   : > { %s1481_s20 = scalar_select %p1280_p6, 1, 0 }
   0xe   : > { %p1477_p9 = scmp.eq.s32.totalorder %s1259_s13, 0  ;;  %p1287_p10 = pnand %p799_p7, %p94_p8 }
   0xf   : > { %s1215_s22 = smov [#allocation2]   ;;  %s1119_s27 = scalar_lea.hbm %s1475_s1, 1024 }
  0x10   : > { %s1482_s21 = scalar_select %p1287_p10, 1, 0 }
  0x11   : > { %s106_s23 = sshll.u32 %s1215_s22, 4  ;;  %p1068_p11 = pneg %p1287_p10  ;;  %s107_s23 = int_to_ptr.vmem [resolvable:$true] %s106_s23 }
  0x12   : > { %p1120_p13 = scmp.ne.s32.totalorder %s1475_s1, %s1119_s27  ;;  %p1126_p3 = scmp.lt.u32.totalorder %s1119_s27, %s1475_s1 }
  0x13   : > { %p1295_p12 = pnand %p1477_p9, %p1068_p11 }
  0x15   : > { %p1121_p0 = pneg %p1295_p12 }
  0x17   : > { %p1122_p1 = pnand %p1121_p0, %p1120_p13 }
  0x19   : > { %p1123_p2 = pneg %p1122_p1 }
  0x1b   : > { %p1128_p4 = pnand %p1126_p3, %p1123_p2 }
  0x1d   : > { %1131 = shalt.err (!%p1128_p4)
}
  0x1e   : > { %s1132_s4 = scalar_lea.vmem %s107_s23, 1024  ;;  %p1140_p9 = scmp.lt.s32.totalorder %s107_s23, %s107_s23 }
  0x1f   : > { %p1133_p7 = scmp.ne.s32.totalorder %s107_s23, %s1132_s4  ;;  %p1141_p6 = scmp.lt.s32.totalorder %s1132_s4, %s1132_s4 }
  0x21   : > { %p1135_p8 = pnand %p1133_p7, %p1121_p0  ;;  %p1142_p5 = por %p1141_p6, %p1140_p9 }
  0x23   : > { %p1136_p11 = pneg %p1135_p8 }
  0x25   : > { %p1143_p10 = pnand %p1142_p5, %p1136_p11 }
  0x27   : > { %1146 = shalt.err (!%p1143_p10)
}
  0x28   : > { %s1216_s5 = smov 128   ;;  %s1217_s6 = smov 8  }
  0x29   : > { %1071 = dma.hbm_to_vmem [thread:$0]  (!%p1295_p12), %s1475_s1, 1024, %s107_s23, [#allocation3], %s1216_s5, %s1216_s5, %s1217_s6  }
  0x2a   : > { %p1484_p13 = scmp.ne.s32.totalorder %s1482_s21, 0 }
  0x2b   : > { %p1485_p1 = scmp.eq.s32.totalorder (!%p1484_p13), %s1259_s13, 0 }
  0x2c   : > { %129 = sbr.rel (%p1484_p13) target bundleno = 460 (0x1cc), region = 28 }
  0x33   : > { %1192 = dma.done.wait (%p1485_p1), [#allocation3], 1024   ;;  %p1486_p0 = pmov %p1485_p1 }
  0x34   : > { %p150_p5 = scmp.lt.s32.totalorder %s1259_s13, 1  ;;  %v1218_v0 = vmov 0   ;;  %v1219_v1 = vmov 0.0|0.0   ;;  %v162_v3 = vld [vmem:[#allocation2] sm:$0xff]  ;;  %v163_v4 = vld [vmem:[#allocation2 + $0x8] sm:$0xff]  ;;  %v164_v7 = vld [vmem:[#allocation2 + $0x10] sm:$0xff] }
  0x35   : > { %1194 = vsyncadd (%p1486_p0), [#allocation3], 4294966272  ;;  %1118 = vset.pattern.permute.xlu0 %v1218_v0  ;;  %1017 = vmatprep.subr.bf16.mxu0 %v1219_v1  ;;  %v175_v5 = vand.u32 4294901760, %v162_v3  ;;  %v178_v6 = vand.u32 4294901760, %v163_v4  ;;  %v165_v8 = vld [vmem:[#allocation2 + $0x18] sm:$0xff]  ;;  %v166_v9 = vld [vmem:[#allocation2 + $0x20] sm:$0xff] }
  0x36   : > { %s151_s14 = scalar_select %p150_p5, %s1259_s13, 1  ;;  %981 = vmatprep.subr.bf16.mxu1 %v1219_v1  ;;  %v181_v10 = vand.u32 4294901760, %v164_v7  ;;  %v184_v11 = vand.u32 4294901760, %v165_v8  ;;  %v167_v12 = vld [vmem:[#allocation2 + $0x28] sm:$0xff]  ;;  %v187_v13 = vand.u32 4294901760, %v166_v9  ;;  %v168_v14 = vld [vmem:[#allocation2 + $0x30] sm:$0xff] }
  0x37   : > { %v169_v15 = vld [vmem:[#allocation2 + $0x38] sm:$0xff]  ;;  %v1328_v16 = vpack.c.bf16 %v178_v6, %v175_v5  ;;  %v1330_v17 = vsub.f32 %v162_v3, %v175_v5  ;;  %v1332_v18 = vsub.f32 %v163_v4, %v178_v6  ;;  %v190_v19 = vand.u32 4294901760, %v167_v12  ;;  %s147_s23 = sand.u32 1, %s1205_s10   ;;  %s810_s25 = sshll.u32 %s1259_s13, 7 }
  0x38   : > { %s805_s16 = sshll.u32 %s151_s14, 3  ;;  %v1334_v20 = vsub.f32 %v164_v7, %v181_v10  ;;  %v1336_v21 = vsub.f32 %v165_v8, %v184_v11  ;;  %v1338_v22 = vsub.f32 %v166_v9, %v187_v13  ;;  %v1342_v23 = vpack.c.bf16 %v184_v11, %v181_v10  ;;  %s804_s24 = sshll.u32 %s147_s23, 3 }
  0x39   : > { %s153_s22 = scalar_lea.vmem %s1474_s0, %s805_s16  ;;  %1019 = vmatpush3.bf16.msra.mxu0 %v1328_v16  ;;  %983 = vmatpush3.bf16.msra.mxu1 %v1328_v16  ;;  %v1344_v24 = vsub.f32 %v167_v12, %v190_v19  ;;  %v193_v25 = vand.u32 4294901760, %v168_v14  ;;  %v196_v26 = vand.u32 4294901760, %v169_v15  ;;  %v260_v27 = vand.u32 4294901760, %v1330_v17  ;;  %s149_s26 = scalar_lea.vmem [#allocation5], %s804_s24 }
  0x3a   : > { %v154_v2 = vld [vmem:[%s153_s22] sm:$0xff]  ;;  %1020 = vmatprep.subr.bf16.mxu0 %v1219_v1  ;;  %984 = vmatprep.subr.bf16.mxu1 %v1219_v1  ;;  %v267_v28 = vand.u32 4294901760, %v1332_v18  ;;  %vm1220_vm0 = vmmov 0   ;;  %v1221_v31 = vmov 0.0   ;;  %v1362_v35 = vpack.c.bf16 %v190_v19, %v187_v13  ;;  %s727_s27 = sshll.u32 %s149_s26, 4  ;;  %s1432_s30 = scalar_lea.hbm %s1476_s2, %s810_s25  ;;  %s1434_s27 = int_to_ptr.vmem [resolvable:$true] %s727_s27 }
  0x3b   : > { %158 = vperm.xlu0 %1118, %v154_v2   ;;  %v1350_v29 = vsub.f32 %v168_v14, %v193_v25  ;;  %v1352_v30 = vsub.f32 %v169_v15, %v196_v26  ;;  %940 = vmatprep.mubr.msk.f32.mxu0 %vm1220_vm0, %v1221_v31  ;;  %v261_v33 = vsub.f32 %v1330_v17, %v260_v27  ;;  %v274_v36 = vand.u32 4294901760, %v1334_v20  ;;  %s714_s3 = scalar_lea.sflag [#allocation4], %s147_s23  ;;  %s1147_s4 = scalar_lea.vmem %s1434_s27, 128 }
  0x3c   : > { %883 = vmatprep.mubr.msk.f32.mxu1 %vm1220_vm0, %v1221_v31  ;;  %v1030_v32 = vpack.c.bf16 %v267_v28, %v260_v27  ;;  %v268_v34 = vsub.f32 %v1332_v18, %v267_v28  ;;  %v281_v37 = vand.u32 4294901760, %v1336_v21  ;;  %v1370_v43 = vpack.c.bf16 %v196_v26, %v193_v25  ;;  %p1148_p6 = scmp.ne.s32.totalorder %s1434_s27, %s1147_s4  ;;  %p1487_p9 = scmp.ne.s32.totalorder %s1480_s19, 0 }
  0x3d   : > { %1022 = vmatpush3.bf16.msra.mxu0 %v1342_v23  ;;  %986 = vmatpush3.bf16.msra.mxu1 %v1342_v23  ;;  %v262_v38 = vand.u32 4294901760, %v261_v33  ;;  %v275_v41 = vsub.f32 %v1334_v20, %v274_v36  ;;  %v288_v47 = vand.u32 4294901760, %v1338_v22  ;;  %v295_v48 = vand.u32 4294901760, %v1344_v24  ;;  %s1222_s13 = smov [#allocation5]  }
  0x3e   : > { %1023 = vmatprep.subr.bf16.mxu0 %v1219_v1  ;;  %987 = vmatprep.subr.bf16.mxu1 %v1219_v1  ;;  %v269_v39 = vand.u32 4294901760, %v268_v34  ;;  %v1033_v40 = vpack.c.bf16 %v281_v37, %v274_v36  ;;  %v282_v42 = vsub.f32 %v1336_v21, %v281_v37  ;;  %v302_v55 = vand.u32 4294901760, %v1350_v29  ;;  %p1149_p10 = pnand %p1148_p6, %p1487_p9  ;;  %s1151_s5 = sshll.u32 %s1222_s13, 4  ;;  %s1152_s5 = int_to_ptr.vmem [resolvable:$false] %s1151_s5 }
  0x3f   : > { %v276_v45 = vand.u32 4294901760, %v275_v41  ;;  %v1036_v50 = vpack.c.bf16 %v295_v48, %v288_v47  ;;  %v289_v51 = vsub.f32 %v1338_v22, %v288_v47  ;;  %v296_v52 = vsub.f32 %v1344_v24, %v295_v48  ;;  %s1153_s6 = scalar_lea.vmem %s1152_s5, 256  ;;  %p1154_p2 = scmp.lt.s32.totalorder %s1434_s27, %s1152_s5 }
  0x40   : > { %v994_v44 = vpack.c.bf16 %v269_v39, %v262_v38  ;;  %v283_v46 = vand.u32 4294901760, %v282_v42  ;;  %v309_v56 = vand.u32 4294901760, %v1352_v30  ;;  %v303_v59 = vsub.f32 %v1350_v29, %v302_v55  ;;  %p1150_p12 = pneg %p1149_p10  ;;  %p1155_p3 = scmp.lt.s32.totalorder %s1153_s6, %s1147_s4 }
  0x41   : > { %1025 = vmatpush3.bf16.msra.mxu0 %v1362_v35  ;;  %989 = vmatpush3.bf16.msra.mxu1 %v1362_v35  ;;  %v290_v53 = vand.u32 4294901760, %v289_v51  ;;  %v297_v54 = vand.u32 4294901760, %v296_v52  ;;  %v1006_v0 = vpack.c.bf16 %v1332_v18, %v1330_v17  ;;  %v1009_v2 = vpack.c.bf16 %v1336_v21, %v1334_v20 }
  0x42   : > { %1026 = vmatprep.subr.bf16.mxu0 %v1219_v1  ;;  %990 = vmatprep.subr.bf16.mxu1 %v1219_v1  ;;  %v997_v49 = vpack.c.bf16 %v283_v46, %v276_v45  ;;  %v1039_v58 = vpack.c.bf16 %v309_v56, %v302_v55  ;;  %v310_v60 = vsub.f32 %v1352_v30, %v309_v56  ;;  %v304_v61 = vand.u32 4294901760, %v303_v59  ;;  %p1156_p4 = por %p1155_p3, %p1154_p2 }
  0x43   : > { %v1000_v57 = vpack.c.bf16 %v297_v54, %v290_v53  ;;  %v1012_v3 = vpack.c.bf16 %v1344_v24, %v1338_v22  ;;  %v1015_v4 = vpack.c.bf16 %v1352_v30, %v1350_v29  ;;  %v155_v5 = vlaneseq }
  0x44   : > { %v311_v62 = vand.u32 4294901760, %v310_v60  ;;  %vm170_vm1 = vcmask 523264   ;;  %p1157_p7 = pnand %p1156_p4, %p1150_p12 }
  0x45   : > { %1028 = vmatpush3.bf16.msra.mxu0 %v1370_v43  ;;  %992 = vmatpush3.bf16.msra.mxu1 %v1370_v43  ;;  %v156_v6 = vand.u32 127, %v155_v5 }
  0x46   : > { %1029 = vmatprep.subr.bf16.mxu0 %v1219_v1  ;;  %993 = vmatprep.subr.bf16.mxu1 %v1219_v1  ;;  %v1003_v63 = vpack.c.bf16 %v311_v62, %v304_v61 }
  0xba   : > { %v159_v7 = vpop.permute.xlu0 %158 }
  0xbb   : > { %vm160_vm2 = vcmp.eq.s32.totalorder %v159_v7, %v156_v6 }
  0xbc   : > { %v161_v8 = vsel %vm160_vm2, 1.0, %v1221_v31 }
  0xbd   : > { %v172_v9 = vsel %vm170_vm1, %v161_v8, 0 }
  0xbe   : > { %v248_v10 = vsub.f32 %v172_v9, %v172_v9 }
  0xc0   : > { %v249_v11 = vand.u32 4294901760, %v248_v10 }
  0xc2   : > { %941 = vmatmul.mubr.f32.vlgmr.msra.gmra.mrb[0].mxu0 %v249_v11  ;;  %v250_v12 = vsub.f32 %v248_v10, %v249_v11 }
  0xc3   : > { %1031 = vmatpush3.bf16.msra.mxu0 %v1030_v32  ;;  %959 = vmatprep.mubr.msk.f32.mxu0 %vm1220_vm0, %v1221_v31 }
  0xc4   : > { %1032 = vmatprep.subr.bf16.mxu0 %v1219_v1  ;;  %v251_v13 = vand.u32 4294901760, %v250_v12 }
  0xc6   : > { %884 = vmatmul.mubr.f32.vlgmr.msra.gmra.mrb[0].mxu1 %v251_v13 }
  0xc7   : > { %995 = vmatpush3.bf16.msra.mxu1 %v994_v44  ;;  %1034 = vmatpush3.bf16.msra.mxu0 %v1033_v40 }
  0xc8   : > { %996 = vmatprep.subr.bf16.mxu1 %v1219_v1  ;;  %1035 = vmatprep.subr.bf16.mxu0 %v1219_v1 }
  0xc9   : > { %902 = vmatprep.mubr.msk.f32.mxu1 %vm1220_vm0, %v1221_v31 }
  0xcb   : > { %998 = vmatpush3.bf16.msra.mxu1 %v997_v49  ;;  %1037 = vmatpush3.bf16.msra.mxu0 %v1036_v50 }
  0xcc   : > { %999 = vmatprep.subr.bf16.mxu1 %v1219_v1  ;;  %1038 = vmatprep.subr.bf16.mxu0 %v1219_v1 }
  0xcf   : > { %1001 = vmatpush3.bf16.msra.mxu1 %v1000_v57  ;;  %1040 = vmatpush3.bf16.msra.mxu0 %v1039_v58 }
  0xd0   : > { %1002 = vmatprep.subr.bf16.mxu1 %v1219_v1  ;;  %1041 = vmatprep.subr.bf16.mxu0 %v1219_v1 }
  0xd2   : > { %960 = vmatmul.mubr.msk.f32.vlgmr.msra.gmra.mrb[0].mxu0 %vm170_vm1, %v161_v8 }
  0xd3   : > { %1004 = vmatpush3.bf16.msra.mxu1 %v1003_v63  ;;  %1043 = vmatpush3.bf16.msra.mxu0 %v1328_v16 }
  0xd4   : > { %1005 = vmatprep.subr.bf16.mxu1 %v1219_v1  ;;  %1044 = vmatprep.subr.bf16.mxu0 %v1219_v1 }
  0xd5   : > { %978 = vmatprep.mubr.msk.f32.mxu0 %vm1220_vm0, %v1221_v31 }
  0xd6   : > { %903 = vmatmul.mubr.msk.f32.vlgmr.msra.gmra.mrb[0].mxu1 %vm170_vm1, %v161_v8 }
  0xd7   : > { %1007 = vmatpush3.bf16.msra.mxu1 %v1006_v0  ;;  %1046 = vmatpush3.bf16.msra.mxu0 %v1342_v23 }
  0xd8   : > { %1008 = vmatprep.subr.bf16.mxu1 %v1219_v1  ;;  %1047 = vmatprep.subr.bf16.mxu0 %v1219_v1 }
  0xd9   : > { %921 = vmatprep.mubr.msk.f32.mxu1 %vm1220_vm0, %v1221_v31 }
  0xdb   : > { %1010 = vmatpush3.bf16.msra.mxu1 %v1009_v2  ;;  %1049 = vmatpush3.bf16.msra.mxu0 %v1362_v35 }
  0xdc   : > { %1011 = vmatprep.subr.bf16.mxu1 %v1219_v1  ;;  %1050 = vmatprep.subr.bf16.mxu0 %v1219_v1 }
  0xdf   : > { %1013 = vmatpush3.bf16.msra.mxu1 %v1012_v3  ;;  %1052 = vmatpush3.bf16.msra.mxu0 %v1370_v43 }
  0xe0   : > { %1014 = vmatprep.subr.bf16.mxu1 %v1219_v1 }
  0xe2   : > { %979 = vmatmul.mubr.msk.f32.vlgmr.msra.gmra.mrb[0].mxu0 %vm170_vm1, %v161_v8 }
  0xe3   : > { %1016 = vmatpush3.bf16.msra.mxu1 %v1015_v4 }
  0xe6   : > { %922 = vmatmul.mubr.f32.vlgmr.msra.gmra.mrb[0].mxu1 %v248_v10 }
 0x1b5   : > { %v707_v14 = vpop.f32.mrb[0].mxu0 }
 0x1b6   : > { %v980_v15 = vpop.f32.mrb[1].mxu0 }
 0x1b9   : > { %v452_v16 = vpop.f32.mrb[0].mxu1 }
 0x1ba   : > { %v1053_v17 = vadd.f32 %v707_v14, %v452_v16  ;;  %v923_v18 = vpop.f32.mrb[1].mxu1 }
 0x1bc   : > { %v711_v19 = vmul.f32 11.313708, %v1053_v17 }
 0x1be   : > { %712 = vst [vmem:[%s149_s26] sm:$0xff] %v711_v19 }
 0x1bf   : > { %1160 = shalt.err (!%p1157_p7)
}
 0x1c0   : > { %s1161_s7 = scalar_lea.hbm %s1432_s30, 128  ;;  %s1165_s16 = scalar_lea.hbm %s1476_s2, 256 }
 0x1c1   : > { %p1162_p8 = scmp.ne.s32.totalorder %s1432_s30, %s1161_s7  ;;  %p1166_p1 = scmp.lt.u32.totalorder %s1432_s30, %s1476_s2 }
 0x1c2   : > { %p1167_p0 = scmp.lt.u32.totalorder %s1165_s16, %s1161_s7  ;;  %p1169_p6 = scmp.lt.u32.totalorder %s1161_s7, %s1432_s30 }
 0x1c3   : > { %p1163_p11 = pnand %p1162_p8, %p1487_p9 }
 0x1c4   : > { %p1168_p5 = por %p1167_p0, %p1166_p1 }
 0x1c5   : > { %p1164_p13 = pneg %p1163_p11 }
 0x1c6   : > { %p1170_p10 = por %p1169_p6, %p1168_p5 }
 0x1c8   : > { %p1171_p12 = pnand %p1170_p10, %p1164_p13 }
 0x1ca   : > { %1174 = shalt.err (!%p1171_p12)
}
 0x1cb   : > { %1066 = dma.vmem_to_hbm [thread:$0]  (%p1487_p9), %s1434_s27, 128, %s1432_s30, %s714_s3  }
 0x1cc PF: > { %p1078_p2 = scmp.ge.s32.totalorder %s1213_s12, 2  ;;  %s739_s22 = sand.u32 1, %s1201_s9  }
 0x1cd   : > { %p1488_p3 = scmp.ne.s32.totalorder %s1481_s20, 0  ;;  %s740_s23 = scalar_lea.sflag [#allocation4], %s739_s22 }
 0x1cf   : > { %p1073_p4 = pnand %p1078_p2, %p1488_p3 }
 0x1d1   : > { %1196 = dma.done.wait (!%p1073_p4), %s740_s23, 128  }
 0x1d2   : > { %1198 = vsyncadd (!%p1073_p4), %s740_s23, 4294967168  ;;  %p13_p7 = scmp.ge.s32.totalorder %s1263_s15, 4   ;;  %s1489_s9 = smov %s1205_s10 }
 0x1d3   : > { %s1490_s10 = smov %s1209_s11  ;;  %s1491_s11 = smov %s1274_s18 }
 0x1d4   : > { %s1492_s12 = smov %s1263_s15  ;;  %15 = sbr.rel (!%p13_p7) target bundleno = 4 (0x4), region = 68 }
 0x1db   :  { %745 = vsyncpa [#allocation3], 1 }
 0x1dc   :  { %747 = vsyncpa [#allocation3 + $0x1], 1 }
 0x1dd   :  { %748 = vsyncpa [#allocation4], 1 }
 0x1de   :  { %750 = vsyncpa [#allocation4 + $0x1], 1 }

</bundles_post_ra>
